<compile_context>
chip_gen: v5e
topology: v5e:2x2
jax: 0.10.0
libtpu: 0.0.40
codegen_flags: <defaults>
</compile_context>

<pallas_src>
import math
from functools import partial

import jax
import jax.numpy as jnp
from jax.experimental import pallas as pl
from jax.experimental.pallas import tpu as pltpu

_LOG_SQRT_2PI = 0.5 * math.log(2.0 * math.pi)


def _round_up(x, m):
    return ((x + m - 1) // m) * m


def _gaussian_policy_kernel(x_ref, w0_ref, w1_ref, w2_ref, c_ref, eps_ref, *rest,
                            h1, h2, adim, out_w, has_a):
    if has_a:
        a_ref, out_ref = rest
    else:
        (out_ref,) = rest

    f32 = jnp.float32
    bf16 = jnp.bfloat16

    # Packed per-layer constants: row 0 = b0, row 1 = b1, row 2 = b2, row 3 = log_std.
    b0 = c_ref[0:1, :h1]
    b1 = c_ref[1:2, :h2]
    b2 = c_ref[2:3, :adim]
    log_std = c_ref[3:4, :adim]

    # ---- MLP mu(x): tanh hidden layers, linear output (output_activation=None).
    # bf16 MXU operands, f32 accumulation; elementwise math in f32.
    x = x_ref[...].astype(bf16)
    h = jnp.tanh(jnp.dot(x, w0_ref[...], preferred_element_type=f32) + b0)
    h = jnp.tanh(jnp.dot(h.astype(bf16), w1_ref[...], preferred_element_type=f32) + b1)
    mu = jnp.dot(h.astype(bf16), w2_ref[...], preferred_element_type=f32) + b2

    # ---- Normal(mu, exp(log_std)) ----
    std = jnp.exp(log_std)                           # (1, A)
    inv_two_var = 0.5 * jnp.exp(-2.0 * log_std)      # 1/(2*std^2), EUP exp (no f32 divide)
    # Constant part of log_prob summed over action dims, hoisted out of the reduction.
    const = -jnp.sum(log_std, axis=1, keepdims=True) - adim * _LOG_SQRT_2PI   # (1, 1)

    # pi = policy.sample()  (reparameterized with externally supplied standard normals)
    d_pi = std * eps_ref[...]                        # == pi - mu exactly
    pi = mu + d_pi
    logp_pi = const - jnp.sum(d_pi * d_pi * inv_two_var, axis=1, keepdims=True)

    parts = [pi, logp_pi]
    if has_a:
        d_a = a_ref[...] - mu
        logp_a = const - jnp.sum(d_a * d_a * inv_two_var, axis=1, keepdims=True)
        parts.append(logp_a)

    used = sum(p.shape[1] for p in parts)
    if used < out_w:
        parts.append(jnp.zeros((pi.shape[0], out_w - used), f32))
    # Single lane-dense (bm, 128) store => unmasked vst, one output DMA stream.
    out_ref[...] = jnp.concatenate(parts, axis=1).astype(out_ref.dtype)


def init_params(key, in_features, hidden_sizes, action_dim):
    """Parameter shapes matching the module: Linear W [in,out], zero biases,
    log_std = -0.5 * ones(action_dim)."""
    sizes = [in_features] + list(hidden_sizes) + [action_dim]
    params = []
    for i in range(len(sizes) - 1):
        key, k = jax.random.split(key)
        bound = 1.0 / math.sqrt(sizes[i])
        w = jax.random.uniform(k, (sizes[i], sizes[i + 1]), jnp.float32, -bound, bound)
        b = jnp.zeros((sizes[i + 1],), jnp.float32)
        params += [w, b]
    log_std = jnp.full((action_dim,), -0.5, jnp.float32)
    return tuple(params + [log_std])


def gaussian_policy_forward(params, x, eps, a=None, *, block_rows=512):
    """Returns (pi, logp, logp_pi) exactly like GaussianPolicy.forward.

    `eps` is standard-normal noise used for the reparameterized sample
    (torch's internal Normal.sample RNG has no direct equivalent here).
    """
    w0, b0, w1, b1, w2, b2, log_std = params
    B, d_in = x.shape
    h1, h2, adim = w0.shape[1], w1.shape[1], w2.shape[1]
    has_a = a is not None

    out_w = 128  # lane-dense output slab: [pi | logp_pi | logp(a)? | zero pad]
    assert adim + 2 <= out_w  # TODO(synk): spill packed outputs across >128 lanes for adim > 126
    cw = _round_up(max(h1, h2, adim), 128)

    # Fold the tiny per-layer constants into one lane-aligned buffer (one DMA).
    consts = jnp.zeros((8, cw), jnp.float32)
    consts = consts.at[0, :h1].set(b0.reshape(-1))
    consts = consts.at[1, :h2].set(b1.reshape(-1))
    consts = consts.at[2, :adim].set(b2.reshape(-1))
    consts = consts.at[3, :adim].set(log_std.reshape(-1))

    bf16 = jnp.bfloat16
    w0b, w1b, w2b = w0.astype(bf16), w1.astype(bf16), w2.astype(bf16)

    bm = max(8, min(block_rows, _round_up(B, 8)))
    grid = (pl.cdiv(B, bm),)

    row = lambda i: (i, 0)     # batch-tiled operands (pipelined per grid step)
    whole = lambda i: (0, 0)   # grid-invariant: stays resident in VMEM

    in_specs = [
        pl.BlockSpec((bm, d_in), row),
        pl.BlockSpec(w0b.shape, whole),
        pl.BlockSpec(w1b.shape, whole),
        pl.BlockSpec(w2b.shape, whole),
        pl.BlockSpec(consts.shape, whole),
        pl.BlockSpec((bm, adim), row),
    ]
    inputs = [x, w0b, w1b, w2b, consts, eps]
    if has_a:
        in_specs.append(pl.BlockSpec((bm, adim), row))
        inputs.append(a)

    kernel = partial(_gaussian_policy_kernel, h1=h1, h2=h2, adim=adim,
                     out_w=out_w, has_a=has_a)

    slab = pl.pallas_call(
        kernel,
        grid=grid,
        out_shape=jax.ShapeDtypeStruct((B, out_w), jnp.float32),
        in_specs=in_specs,
        out_specs=pl.BlockSpec((bm, out_w), row),
        compiler_params=pltpu.CompilerParams(dimension_semantics=("parallel",)),
    )(*inputs)

    pi = slab[:, :adim]
    logp_pi = slab[:, adim]
    logp = slab[:, adim + 1] if has_a else None
    return pi, logp, logp_pi


def _reference(params, x, eps, a):
    # Pure-JAX reference mirroring the kernel's bf16 matmul operands (f32 accumulation).
    w0, b0, w1, b1, w2, b2, log_std = params
    bf16, f32 = jnp.bfloat16, jnp.float32

    def dot(u, w):
        return jnp.dot(u.astype(bf16), w.astype(bf16), preferred_element_type=f32)

    h = jnp.tanh(dot(x, w0) + b0)
    h = jnp.tanh(dot(h, w1) + b1)
    mu = dot(h, w2) + b2
    std = jnp.exp(log_std)
    pi = mu + std * eps

    def log_prob(v):
        return (-((v - mu) ** 2) / (2.0 * std * std)
                - log_std - 0.5 * jnp.log(2.0 * jnp.pi))

    return pi, jnp.sum(log_prob(a), axis=1), jnp.sum(log_prob(pi), axis=1)


if __name__ == "__main__":
    in_features, hidden_sizes, action_dim = 16, (32, 32), 4
    batch = 8

    root = jax.random.PRNGKey(0)
    k_params, k_x, k_eps, k_a = jax.random.split(root, 4)

    params = init_params(k_params, in_features, hidden_sizes, action_dim)
    x = jax.random.normal(k_x, (batch, in_features), jnp.float32)
    eps = jax.random.normal(k_eps, (batch, action_dim), jnp.float32)  # sampling noise
    a = jax.random.normal(k_a, (batch, action_dim), jnp.float32)

    # Training path (a provided -> logp computed).
    pi, logp, logp_pi = gaussian_policy_forward(params, x, eps, a=a)
    jax.block_until_ready((pi, logp, logp_pi))

    # Rollout path (a=None -> logp is None, no dead logp(a) work).
    pi2, logp_none, logp_pi2 = gaussian_policy_forward(params, x, eps, a=None)
    jax.block_until_ready((pi2, logp_pi2))
    assert logp_none is None

    ref_pi, ref_logp, ref_logp_pi = _reference(params, x, eps, a)
    assert jnp.allclose(pi, ref_pi, atol=2e-2, rtol=2e-2)
    assert jnp.allclose(logp, ref_logp, atol=5e-2, rtol=2e-2)
    assert jnp.allclose(logp_pi, ref_logp_pi, atol=5e-2, rtol=2e-2)
    # Both kernel variants must agree on the shared outputs.
    assert jnp.allclose(pi2, pi, atol=1e-5, rtol=1e-5)
    assert jnp.allclose(logp_pi2, logp_pi, atol=1e-5, rtol=1e-5)

    print("KERNEL_OK")
</pallas_src>

<mosaic_0001>
module attributes {stable_mosaic.version = 11 : i64} {
  func.func @_gaussian_policy_kernel(%arg0: i32, %arg1: memref<8x16xf32, #tpu.memory_space<vmem>>, %arg2: memref<16x32xbf16, #tpu.memory_space<vmem>>, %arg3: memref<32x32xbf16, #tpu.memory_space<vmem>>, %arg4: memref<32x4xbf16, #tpu.memory_space<vmem>>, %arg5: memref<8x128xf32, #tpu.memory_space<vmem>>, %arg6: memref<8x4xf32, #tpu.memory_space<vmem>>, %arg7: memref<8x4xf32, #tpu.memory_space<vmem>>, %arg8: memref<8x128xf32, #tpu.memory_space<vmem>>) attributes {dimension_semantics = [#tpu.dimension_semantics<parallel>], iteration_bounds = array<i64: 1>, scalar_prefetch = 0 : i64, scratch_operands = 0 : i64, tpu.core_type = #tpu.core_type<tc>, window_params = [{transform_indices = @transform_0, window_bounds = array<i64: 8, 16>}, {pipeline_mode = #tpu.pipeline_mode<synchronous>, transform_indices = @transform_1, window_bounds = array<i64: 16, 32>}, {pipeline_mode = #tpu.pipeline_mode<synchronous>, transform_indices = @transform_2, window_bounds = array<i64: 32, 32>}, {pipeline_mode = #tpu.pipeline_mode<synchronous>, transform_indices = @transform_3, window_bounds = array<i64: 32, 4>}, {pipeline_mode = #tpu.pipeline_mode<synchronous>, transform_indices = @transform_4, window_bounds = array<i64: 8, 128>}, {transform_indices = @transform_5, window_bounds = array<i64: 8, 4>}, {transform_indices = @transform_6, window_bounds = array<i64: 8, 4>}, {transform_indices = @transform_7, window_bounds = array<i64: 8, 128>}]} {
    %c0 = arith.constant 0 : index
    %c0_0 = arith.constant 0 : index
    %0 = vector.load %arg5[%c0, %c0_0] : memref<8x128xf32, #tpu.memory_space<vmem>>, vector<1x32xf32>
    %c1 = arith.constant 1 : index
    %c0_1 = arith.constant 0 : index
    %1 = vector.load %arg5[%c1, %c0_1] : memref<8x128xf32, #tpu.memory_space<vmem>>, vector<1x32xf32>
    %c2 = arith.constant 2 : index
    %c0_2 = arith.constant 0 : index
    %2 = vector.load %arg5[%c2, %c0_2] : memref<8x128xf32, #tpu.memory_space<vmem>>, vector<1x4xf32>
    %c3 = arith.constant 3 : index
    %c0_3 = arith.constant 0 : index
    %3 = vector.load %arg5[%c3, %c0_3] : memref<8x128xf32, #tpu.memory_space<vmem>>, vector<1x4xf32>
    %c0_4 = arith.constant 0 : index
    %c0_5 = arith.constant 0 : index
    %4 = vector.load %arg1[%c0_4, %c0_5] : memref<8x16xf32, #tpu.memory_space<vmem>>, vector<8x16xf32>
    %5 = arith.truncf %4 : vector<8x16xf32> to vector<8x16xbf16>
    %c0_6 = arith.constant 0 : index
    %c0_7 = arith.constant 0 : index
    %6 = vector.load %arg2[%c0_6, %c0_7] : memref<16x32xbf16, #tpu.memory_space<vmem>>, vector<16x32xbf16>
    %cst = arith.constant dense<0.000000e+00> : vector<8x32xf32>
    %7 = tpu.matmul %5, %6, %cst {dimension_numbers = #tpu.dot_dimension_numbers<[1], [0], [0], [1], [0, 0, 1, 1], [], []>} : vector<8x16xbf16>, vector<16x32xbf16>, vector<8x32xf32> -> vector<8x32xf32>
    %8 = vector.broadcast %0 : vector<1x32xf32> to vector<8x32xf32>
    %9 = arith.addf %7, %8 : vector<8x32xf32>
    %10 = math.tanh %9 : vector<8x32xf32>
    %11 = arith.truncf %10 : vector<8x32xf32> to vector<8x32xbf16>
    %c0_8 = arith.constant 0 : index
    %c0_9 = arith.constant 0 : index
    %12 = vector.load %arg3[%c0_8, %c0_9] : memref<32x32xbf16, #tpu.memory_space<vmem>>, vector<32x32xbf16>
    %cst_10 = arith.constant dense<0.000000e+00> : vector<8x32xf32>
    %13 = tpu.matmul %11, %12, %cst_10 {dimension_numbers = #tpu.dot_dimension_numbers<[1], [0], [0], [1], [0, 0, 1, 1], [], []>} : vector<8x32xbf16>, vector<32x32xbf16>, vector<8x32xf32> -> vector<8x32xf32>
    %14 = vector.broadcast %1 : vector<1x32xf32> to vector<8x32xf32>
    %15 = arith.addf %13, %14 : vector<8x32xf32>
    %16 = math.tanh %15 : vector<8x32xf32>
    %17 = arith.truncf %16 : vector<8x32xf32> to vector<8x32xbf16>
    %c0_11 = arith.constant 0 : index
    %c0_12 = arith.constant 0 : index
    %18 = vector.load %arg4[%c0_11, %c0_12] : memref<32x4xbf16, #tpu.memory_space<vmem>>, vector<32x4xbf16>
    %cst_13 = arith.constant dense<0.000000e+00> : vector<8x4xf32>
    %19 = tpu.matmul %17, %18, %cst_13 {dimension_numbers = #tpu.dot_dimension_numbers<[1], [0], [0], [1], [0, 0, 1, 1], [], []>} : vector<8x32xbf16>, vector<32x4xbf16>, vector<8x4xf32> -> vector<8x4xf32>
    %20 = vector.broadcast %2 : vector<1x4xf32> to vector<8x4xf32>
    %21 = arith.addf %19, %20 : vector<8x4xf32>
    %22 = math.exp %3 : vector<1x4xf32>
    %cst_14 = arith.constant -2.000000e+00 : f32
    %23 = vector.broadcast %cst_14 : f32 to vector<1x4xf32>
    %24 = arith.mulf %23, %3 : vector<1x4xf32>
    %25 = math.exp %24 : vector<1x4xf32>
    %cst_15 = arith.constant 5.000000e-01 : f32
    %26 = vector.broadcast %cst_15 : f32 to vector<1x4xf32>
    %27 = arith.mulf %26, %25 : vector<1x4xf32>
    %cst_16 = arith.constant dense<0.000000e+00> : vector<1xf32>
    %28 = vector.multi_reduction <add>, %3, %cst_16 [1] : vector<1x4xf32> to vector<1xf32>
    %29 = vector.shape_cast %28 : vector<1xf32> to vector<1x1xf32>
    %cst_17 = arith.constant 0.000000e+00 : f32
    %30 = vector.broadcast %cst_17 : f32 to vector<1x1xf32>
    %31 = arith.subf %30, %29 : vector<1x1xf32>
    %cst_18 = arith.constant 3.67575407 : f32
    %32 = vector.broadcast %cst_18 : f32 to vector<1x1xf32>
    %33 = arith.subf %31, %32 : vector<1x1xf32>
    %c0_19 = arith.constant 0 : index
    %c0_20 = arith.constant 0 : index
    %34 = vector.load %arg6[%c0_19, %c0_20] : memref<8x4xf32, #tpu.memory_space<vmem>>, vector<8x4xf32>
    %35 = vector.broadcast %22 : vector<1x4xf32> to vector<8x4xf32>
    %36 = arith.mulf %35, %34 : vector<8x4xf32>
    %37 = arith.addf %21, %36 : vector<8x4xf32>
    %38 = arith.mulf %36, %36 : vector<8x4xf32>
    %39 = vector.broadcast %27 : vector<1x4xf32> to vector<8x4xf32>
    %40 = arith.mulf %38, %39 : vector<8x4xf32>
    %cst_21 = arith.constant dense<0.000000e+00> : vector<8xf32>
    %41 = vector.multi_reduction <add>, %40, %cst_21 [1] : vector<8x4xf32> to vector<8xf32>
    %42 = vector.shape_cast %41 : vector<8xf32> to vector<8x1xf32>
    %43 = vector.broadcast %33 : vector<1x1xf32> to vector<8x1xf32>
    %44 = arith.subf %43, %42 : vector<8x1xf32>
    %c0_22 = arith.constant 0 : index
    %c0_23 = arith.constant 0 : index
    %45 = vector.load %arg7[%c0_22, %c0_23] : memref<8x4xf32, #tpu.memory_space<vmem>>, vector<8x4xf32>
    %46 = arith.subf %45, %21 : vector<8x4xf32>
    %47 = arith.mulf %46, %46 : vector<8x4xf32>
    %48 = vector.broadcast %27 : vector<1x4xf32> to vector<8x4xf32>
    %49 = arith.mulf %47, %48 : vector<8x4xf32>
    %cst_24 = arith.constant dense<0.000000e+00> : vector<8xf32>
    %50 = vector.multi_reduction <add>, %49, %cst_24 [1] : vector<8x4xf32> to vector<8xf32>
    %51 = vector.shape_cast %50 : vector<8xf32> to vector<8x1xf32>
    %52 = vector.broadcast %33 : vector<1x1xf32> to vector<8x1xf32>
    %53 = arith.subf %52, %51 : vector<8x1xf32>
    %cst_25 = arith.constant 0.000000e+00 : f32
    %54 = vector.broadcast %cst_25 : f32 to vector<8x122xf32>
    %55 = tpu.concatenate %37, %44, %53, %54 in 1 : vector<8x4xf32>, vector<8x1xf32>, vector<8x1xf32>, vector<8x122xf32> -> vector<8x128xf32>
    %c0_26 = arith.constant 0 : index
    %c0_27 = arith.constant 0 : index
    %56 = vector.load %arg8[%c0_26, %c0_27] : memref<8x128xf32, #tpu.memory_space<vmem>>, vector<8x128xf32>
    tpu.vector_store %arg8[%c0_26, %c0_27], %55 {strides = array<i32>} : memref<8x128xf32, #tpu.memory_space<vmem>>, vector<8x128xf32>,
    return
  }
  func.func @transform_0(%arg0: i32) -> (i32, i32) {
    %c0_i32 = arith.constant 0 : i32
    %c0_i32_0 = arith.constant 0 : i32
    return %arg0, %c0_i32 : i32, i32
  }
  func.func @transform_1(%arg0: i32) -> (i32, i32) {
    %c0_i32 = arith.constant 0 : i32
    %c0_i32_0 = arith.constant 0 : i32
    %c0_i32_1 = arith.constant 0 : i32
    return %c0_i32, %c0_i32_0 : i32, i32
  }
  func.func @transform_2(%arg0: i32) -> (i32, i32) {
    %c0_i32 = arith.constant 0 : i32
    %c0_i32_0 = arith.constant 0 : i32
    %c0_i32_1 = arith.constant 0 : i32
    return %c0_i32, %c0_i32_0 : i32, i32
  }
  func.func @transform_3(%arg0: i32) -> (i32, i32) {
    %c0_i32 = arith.constant 0 : i32
    %c0_i32_0 = arith.constant 0 : i32
    %c0_i32_1 = arith.constant 0 : i32
    return %c0_i32, %c0_i32_0 : i32, i32
  }
  func.func @transform_4(%arg0: i32) -> (i32, i32) {
    %c0_i32 = arith.constant 0 : i32
    %c0_i32_0 = arith.constant 0 : i32
    %c0_i32_1 = arith.constant 0 : i32
    return %c0_i32, %c0_i32_0 : i32, i32
  }
  func.func @transform_5(%arg0: i32) -> (i32, i32) {
    %c0_i32 = arith.constant 0 : i32
    %c0_i32_0 = arith.constant 0 : i32
    return %arg0, %c0_i32 : i32, i32
  }
  func.func @transform_6(%arg0: i32) -> (i32, i32) {
    %c0_i32 = arith.constant 0 : i32
    %c0_i32_0 = arith.constant 0 : i32
    return %arg0, %c0_i32 : i32, i32
  }
  func.func @transform_7(%arg0: i32) -> (i32, i32) {
    %c0_i32 = arith.constant 0 : i32
    %c0_i32_0 = arith.constant 0 : i32
    return %arg0, %c0_i32 : i32, i32
  }
}

</mosaic_0001>

<bundles_post_ra>
// kernel: tpu_custom_call.1
= control target key start
LH: loop header
LB: loop body
LE: loop exit
PB: predicated region body
PF: predicated region fallthrough
CT: control target
= control target key end

     0   :  { %12 = vsyncpa [#allocation3], 0  ;;  %s372_s0 = inlined_call_operand.vmem [shape: f32[8,16], index: 0, kind: input, shape index: {}]   ;;  %s373_s1 = inlined_call_operand.vmem [shape: bf16[16,32], index: 1, kind: input, shape index: {}]   ;;  %s374_s2 = inlined_call_operand.vmem [shape: bf16[32,32], index: 2, kind: input, shape index: {}]   ;;  %s375_s3 = inlined_call_operand.vmem [shape: bf16[32,4], index: 3, kind: input, shape index: {}]   ;;  %s376_s4 = inlined_call_operand.hbm [shape: f32[8,128], index: 4, kind: input, shape index: {}]   ;;  %s377_s5 = inlined_call_operand.vmem [shape: f32[8,4], index: 5, kind: input, shape index: {}]   ;;  %s378_s6 = inlined_call_operand.vmem [shape: f32[8,4], index: 6, kind: input, shape index: {}]   ;;  %s379_s7 = inlined_call_operand.hbm [shape: f32[8,128], index: 7, kind: output, shape index: {}]  }
   0x1   :  { %13 = vsyncpa [#allocation4], 0  ;;  %s27_s26 = sshll.u32 %s376_s4, 4  ;;  %s295_s27 = smov [#allocation2]   ;;  %s28_s26 = int_to_ptr.hbm [resolvable:$true] %s27_s26 }
   0x2   :  { %s29_s28 = sshll.u32 %s295_s27, 4  ;;  %s30_s28 = int_to_ptr.vmem [resolvable:$true] %s29_s28 }
   0x3   :  { %32 = dma.hbm_to_vmem [thread:$0]  %s28_s26, 128, %s30_s28, [#allocation3]  }
   0x4   :  { %291 = dma.done.wait [#allocation3], 128  }
   0x5   :  { %292 = vsyncadd [#allocation3], 4294967168  ;;  %v225_v0 = vld [vmem:[%s373_s1] sm:$0xff]  ;;  %vm57_vm0 = vcmask 130048   ;;  %v227_v3 = vld [vmem:[%s374_s2 + $0x8] sm:$0xff]  ;;  %vm93_vm1 = vcmask 261120  }
   0x6   :  { %v46_v1 = vld [vmem:[%s372_s0] sm:$0xff]  ;;  %68 = vmatpush.bf16.msra.mxu0 %v225_v0  ;;  %103 = vmatpush.bf16.msra.mxu1 %v227_v3  ;;  %v229_v11 = vld [vmem:[%s375_s3 + $0x8] sm:$0xff]  ;;  %vm151_vm2 = vcmask 24576   ;;  %vm164_vm3 = vcmask 31744   ;;  %vm179_vm4 = vcmask 39936   ;;  %s296_s16 = smov [#allocation5]  }
   0x7   :  { %v47_v2 = vpack.c.bf16 %v46_v1, %v46_v1  ;;  %v226_v4 = vld [vmem:[%s374_s2] sm:$0xff]  ;;  %138 = vmatpush.bf16.msra.mxu2 %v229_v11  ;;  %s189_s17 = sshll.u32 %s296_s16, 4  ;;  %s191_s19 = sshll.u32 %s379_s7, 4  ;;  %vm181_vm5 = vcmask 48128   ;;  %s190_s17 = int_to_ptr.vmem [resolvable:$true] %s189_s17  ;;  %s192_s19 = int_to_ptr.hbm [resolvable:$true] %s191_s19 }
   0x8   :  { %v232_v5 = vld [vmem:[#allocation2] ss:$0 sm:$0xff]  ;;  %v45_v13 = vld [vmem:[#allocation2 + $0x3] sm:$0x1]  ;;  %v233_v27 = vld [vmem:[#allocation2 + $0x1] ss:$0 sm:$0xff] }
   0x9   :  { %205 = vmatmul.msk.bf16.vlgmr.msra.gmra.mxu0 %vm57_vm0, %v47_v2  ;;  %v228_v12 = vld [vmem:[%s375_s3] sm:$0xff]  ;;  %v145_v14 = vmul.f32 1.442695, %v45_v13  ;;  %v147_v15 = vmul.f32 -2.0, %v45_v13  ;;  %v152_v16 = vsel %vm151_vm2, %v45_v13, 0.0 }
   0xa   :  { %104 = vmatpush.bf16.msra.mxu1 %v226_v4  ;;  %153 = vadd.xlane.f32.xlu0 %v152_v16  ;;  %v157_v19 = vld [vmem:[%s377_s5] sm:$0xff] }
   0xb   :  { %139 = vmatpush.bf16.msra.mxu2 %v228_v12  ;;  %v148_v17 = vmul.f32 1.442695, %v147_v15  ;;  %v234_v34 = vld [vmem:[#allocation2 + $0x2] ss:$0 sm:$0xff] }
   0xc   :  { %v170_v36 = vld [vmem:[%s378_s6] sm:$0xff] }
  0x7d   :  { %v154_v43 = vpop.xlane.xlu0 %153 }
  0x7e   :  { %v155_v44 = vsub.f32 0.0, %v154_v43 }
  0x80   :  { %v224_v45 = vadd.f32 -3.675754, %v155_v44 }
  0x82   :  { %v168_v46 = vperm.slane %v224_v45, 0 }
  0x86   :  { %v70_v6 = vpop.f32.mrf.mxu0 }
  0x87   :  { %v71_v7 = vadd.f32 %v232_v5, %v70_v6 }
  0x89   :  { %235 = vtanh.f32 %v71_v7 }
  0x8a   :  { %237 = vpow2.f32 %v145_v14 }
  0x8b   :  { %239 = vpow2.f32 %v148_v17 }
  0x8e   :  { %v72_v8 = vpop.f32.mrf.mxu0 }
  0x8f   :  { %v236_v9 = vpop.eup %235 }
  0x90   :  { %v75_v10 = vpack.c.bf16 %v236_v9, %v236_v9  ;;  %v238_v18 = vpop.eup %237 }
  0x91   :  { %v158_v20 = vperm.slane %v238_v18, 0  ;;  %v240_v21 = vpop.eup %239 }
  0x92   :  { %214 = vmatmul.msk.bf16.vlgmr.msra.gmra.mxu1 %vm93_vm1, %v75_v10  ;;  %v150_v22 = vmul.f32 0.5, %v240_v21 }
  0x93   :  { %v159_v23 = vmul.f32 %v158_v20, %v157_v19 }
  0x94   :  { %v162_v25 = vperm.slane %v150_v22, 0 }
  0x95   :  { %v161_v24 = vmul.f32 %v159_v23, %v159_v23 }
  0x97   :  { %v163_v26 = vmul.f32 %v162_v25, %v161_v24 }
  0x99   :  { %v165_v28 = vsel %vm164_vm3, %v163_v26, 0.0 }
  0x9a   :  { %166 = vadd.xlane.f32.xlu0 %v165_v28 }
 0x10d   :  { %v167_v47 = vpop.xlane.xlu0 %166 }
 0x10e   :  { %v169_v49 = vsub.f32 %v168_v46, %v167_v47 }
 0x10f   :  { %v106_v29 = vpop.f32.mrf.mxu1 }
 0x110   :  { %v107_v30 = vadd.f32 %v233_v27, %v106_v29 }
 0x112   :  { %241 = vtanh.f32 %v107_v30 }
 0x117   :  { %v108_v31 = vpop.f32.mrf.mxu1 }
 0x118   :  { %v242_v32 = vpop.eup %241 }
 0x119   :  { %v111_v33 = vpack.c.bf16 %v242_v32, %v242_v32 }
 0x11b   :  { %223 = vmatmul.msk.bf16.vlgmr.msra.gmra.mxu2 %vm93_vm1, %v111_v33 }
 0x19e   :  { %v141_v35 = vpop.f32.mrf.mxu2 }
 0x19f   :  { %v142_v37 = vadd.f32 %v234_v34, %v141_v35 }
 0x1a1   :  { %v171_v38 = vsub.f32 %v170_v36, %v142_v37  ;;  %v160_v48 = vadd.f32 %v159_v23, %v142_v37 }
 0x1a3   :  { %v172_v39 = vmul.f32 %v171_v38, %v171_v38  ;;  %v178_v52 = vsel %vm164_vm3, %v160_v48, %v169_v49 }
 0x1a5   :  { %v173_v40 = vmul.f32 %v172_v39, %v162_v25 }
 0x1a6   :  { %v143_v41 = vpop.f32.mrf.mxu2 }
 0x1a7   :  { %v174_v42 = vsel %vm164_vm3, %v173_v40, 0.0 }
 0x1a8   :  { %175 = vadd.xlane.f32.xlu1 %v174_v42 }
 0x21b   :  { %v176_v50 = vpop.xlane.xlu1 %175 }
 0x21c   :  { %v177_v51 = vsub.f32 %v168_v46, %v176_v50 }
 0x21e   :  { %v180_v53 = vsel %vm179_vm4, %v178_v52, %v177_v51 }
 0x21f   :  { %v182_v54 = vsel %vm181_vm5, %v180_v53, 0.0 }
 0x220   :  { %183 = vst [vmem:[#allocation5] sm:$0xff] %v182_v54 }
 0x221   :  { %194 = dma.vmem_to_hbm [thread:$0]  %s190_s17, 128, %s192_s19, [#allocation4]  }
 0x222   :  { %293 = dma.done.wait [#allocation4], 128  }
 0x223   :  { %294 = vsyncadd [#allocation4], 4294967168 }
 0x224   :  { %199 = vsyncpa [#allocation3], 1 }
 0x225   :  { %200 = vsyncpa [#allocation4], 1 }

</bundles_post_ra>
